<compile_context>
chip_gen: v7x
topology: tpu7x:2x2x1
jax: 0.10.0
libtpu: 0.0.40
codegen_flags: <defaults>
</compile_context>

<pallas_src>
import functools
import math

import jax
import jax.numpy as jnp
from jax import lax
from jax.experimental import pallas as pl
from jax.experimental.pallas import tpu as pltpu

_INV_SQRT2 = 1.0 / math.sqrt(2.0)
_SQRT_2_OVER_PI = math.sqrt(2.0 / math.pi)


def _gelu_f32(h, approx):
    """GELU on an f32 array.  approx=True -> tanh form (EUP); False -> exact erf."""
    if approx:
        return 0.5 * h * (1.0 + jnp.tanh(_SQRT_2_OVER_PI * (h + 0.044715 * h * h * h)))
    return 0.5 * h * (1.0 + lax.erf(h * _INV_SQRT2))


# -----------------------------------------------------------------------------
# Kernels
# -----------------------------------------------------------------------------
def _mlp_resident_kernel(x_ref, w1_ref, b1_ref, w2_ref, b2_ref, o_ref, *, approx):
    # Weights have constant index_maps -> live in VMEM for the whole kernel.
    h = jnp.dot(x_ref[...], w1_ref[...], preferred_element_type=jnp.float32)
    h = _gelu_f32(h + b1_ref[...].astype(jnp.float32), approx)
    out = jnp.dot(h.astype(w2_ref.dtype), w2_ref[...],
                  preferred_element_type=jnp.float32)
    o_ref[...] = (out + b2_ref[...].astype(jnp.float32)).astype(o_ref.dtype)


def _mlp_chunked_kernel(x_ref, w1_ref, b1_ref, w2_ref, b2_ref, o_ref,
                        acc_ref=None, *, approx):
    # acc_ref is None when the output dtype is f32: accumulate straight into o_ref.
    acc = o_ref if acc_ref is None else acc_ref
    d = pl.program_id(1)

    @pl.when(d == 0)
    def _():
        acc[...] = jnp.zeros_like(acc)

    h = jnp.dot(x_ref[...], w1_ref[...], preferred_element_type=jnp.float32)
    h = _gelu_f32(h + b1_ref[...].astype(jnp.float32), approx)
    acc[...] += jnp.dot(h.astype(w2_ref.dtype), w2_ref[...],
                        preferred_element_type=jnp.float32)

    @pl.when(d == pl.num_programs(1) - 1)
    def _():
        o_ref[...] = (acc[...] + b2_ref[...].astype(jnp.float32)).astype(o_ref.dtype)


# -----------------------------------------------------------------------------
# Wrapper
# -----------------------------------------------------------------------------
def _round_up(a, b):
    return ((a + b - 1) // b) * b


def _cdiv(a, b):
    return (a + b - 1) // b


def _vmem_cap_bytes():
    try:
        return int(pltpu.get_tpu_info().vmem_capacity_bytes)
    except Exception:
        return 64 << 20  # v7x per-TensorCore size: conservative everywhere


def mlp_block(x, w1, b1, w2, b2, *, tile_m=512, tile_d=1024,
              approx_gelu=True, weights_resident=None):
    """x: (..., w_in). w1: (w_in, mlp_d), b1: (mlp_d,), w2: (mlp_d, w_in), b2: (w_in,).

    approx_gelu=True uses the tanh-approx GELU (EUP-friendly, ~1e-3 from the
    exact erf); approx_gelu=False matches PyTorch's default nn.GELU exactly.
    """
    orig_shape = x.shape
    w_in = orig_shape[-1]
    mlp_d = w1.shape[1]
    assert w1.shape == (w_in, mlp_d) and w2.shape == (mlp_d, w_in)
    assert b1.shape == (mlp_d,) and b2.shape == (w_in,)

    x2d = x.reshape(-1, w_in)
    M = x2d.shape[0]
    out_dtype = x.dtype

    in_isz = jnp.dtype(x.dtype).itemsize
    w_isz = jnp.dtype(w1.dtype).itemsize
    out_isz = jnp.dtype(out_dtype).itemsize

    # Sublane packing for the row tile: 8 f32 / 16 bf16 / 32 int8-fp8.
    sublane = 8 * max(1, 4 // in_isz)

    cap = _vmem_cap_bytes()
    budget = int(cap * 0.80)

    # --- row tile candidate ---------------------------------------------------
    tm = min(tile_m, _round_up(M, sublane))
    tm = max(sublane, (tm // sublane) * sublane)

    # --- decide whether the full weights fit in VMEM ---------------------------
    w_total = (w_in * mlp_d + mlp_d * w_in + mlp_d + w_in) * w_isz

    def resident_need(tm_):
        return (2 * tm_ * w_in * (in_isz + out_isz)   # x + out tiles, double-buffered
                + 2 * w_total                         # weights/biases (budget 2 buffers)
                + 2 * tm_ * mlp_d * 4)                # f32 hidden intermediate

    if weights_resident is None:
        weights_resident = resident_need(tm) <= budget

    mlp_pad = mlp_d

    if weights_resident:
        # Keep grid[0] >= 2 when the problem allows it: v7x has 2 TensorCores and
        # the "parallel" M axis is what shards across them.  Free here, since the
        # weights are only DMA'd once regardless of the number of M tiles.
        if M <= tm and M > sublane:
            tm_half = _round_up(_cdiv(M, 2), sublane)
            if tm_half < tm:
                tm = tm_half

        M_pad = _round_up(M, tm)
        grid = (M_pad // tm,)
        need = resident_need(tm)

        in_specs = [
            pl.BlockSpec((tm, w_in), lambda i: (i, 0)),        # x row tile
            pl.BlockSpec((w_in, mlp_d), lambda i: (0, 0)),     # W1, resident
            pl.BlockSpec((1, mlp_d), lambda i: (0, 0)),        # b1, resident
            pl.BlockSpec((mlp_d, w_in), lambda i: (0, 0)),     # W2, resident
            pl.BlockSpec((1, w_in), lambda i: (0, 0)),         # b2, resident
        ]
        out_specs = pl.BlockSpec((tm, w_in), lambda i: (i, 0))
        scratch_shapes = ()
        kernel = functools.partial(_mlp_resident_kernel, approx=approx_gelu)
        dim_sem = ("parallel",)
        bytes_accessed = (M_pad * w_in * in_isz + w_total + M_pad * w_in * out_isz)
    else:
        # --- reduction chunk over mlp_d: 128-aligned, zero-pad if needed -------
        if mlp_d <= tile_d:
            td = mlp_d
        else:
            td = max(128, (min(tile_d, mlp_d) // 128) * 128)

        def chunked_need(tm_, td_):
            acc_bytes = 0 if out_dtype == jnp.float32 else tm_ * w_in * 4
            return (2 * tm_ * w_in * (in_isz + out_isz)          # x + out tiles
                    + 2 * (w_in * td_ + td_ * w_in) * w_isz      # W1/W2 slabs (2 bufs)
                    + 2 * (td_ + w_in) * w_isz                   # bias slabs
                    + 2 * tm_ * td_ * 4                          # f32 hidden chunk
                    + acc_bytes)

        # Shrink until the tiling fits the chip's VMEM budget.
        while chunked_need(tm, td) > budget and td > 128 and td % 256 == 0:
            td //= 2
        while chunked_need(tm, td) > budget and tm > sublane:
            tm = max(sublane, ((tm // 2) // sublane) * sublane)

        mlp_pad = _round_up(mlp_d, td)
        if mlp_pad != mlp_d:
            # Zero columns of W1 / entries of b1 give h == 0; GELU(0) == 0, so the
            # padded rows of W2 contribute exactly 0 to the output.
            pad = mlp_pad - mlp_d
            w1 = jnp.pad(w1, ((0, 0), (0, pad)))
            b1 = jnp.pad(b1, ((0, pad),))
            w2 = jnp.pad(w2, ((0, pad), (0, 0)))

        M_pad = _round_up(M, tm)
        grid = (M_pad // tm, mlp_pad // td)
        need = chunked_need(tm, td)

        in_specs = [
            pl.BlockSpec((tm, w_in), lambda i, d: (i, 0)),      # x row tile
            pl.BlockSpec((w_in, td), lambda i, d: (0, d)),      # W1 slab
            pl.BlockSpec((1, td), lambda i, d: (0, d)),         # b1 slab
            pl.BlockSpec((td, w_in), lambda i, d: (d, 0)),      # W2 slab
            pl.BlockSpec((1, w_in), lambda i, d: (0, 0)),       # b2
        ]
        out_specs = pl.BlockSpec((tm, w_in), lambda i, d: (i, 0))
        if out_dtype == jnp.float32:
            scratch_shapes = ()                                  # accumulate in o_ref
        else:
            scratch_shapes = (pltpu.VMEM((tm, w_in), jnp.float32),)
        kernel = functools.partial(_mlp_chunked_kernel, approx=approx_gelu)
        dim_sem = ("parallel", "arbitrary")
        bytes_accessed = (M_pad * w_in * in_isz
                          + grid[0] * (w1.size + w2.size) * w_isz   # re-streamed slabs
                          + (b1.size + b2.size) * w_isz
                          + M_pad * w_in * out_isz)

    # Pad rows after the final row tile is known.
    if M_pad != M:
        x2d = jnp.pad(x2d, ((0, M_pad - M), (0, 0)))

    b1_2d = b1.reshape(1, -1)
    b2_2d = b2.reshape(1, -1)

    # Generation-aware VMEM limit: never request more than the chip has.
    vmem_limit = max(32 << 20, int(need * 1.4), int(need) + (4 << 20))
    vmem_limit = int(min(vmem_limit, cap * 0.94))

    cost = pl.CostEstimate(flops=int(4 * M_pad * w_in * mlp_pad),
                           transcendentals=int(M_pad * mlp_pad),
                           bytes_accessed=int(bytes_accessed))

    out = pl.pallas_call(
        kernel,
        out_shape=jax.ShapeDtypeStruct((M_pad, w_in), out_dtype),
        grid_spec=pltpu.PrefetchScalarGridSpec(
            num_scalar_prefetch=0,
            grid=grid,
            in_specs=in_specs,
            out_specs=out_specs,
            scratch_shapes=scratch_shapes,
        ),
        compiler_params=pltpu.CompilerParams(
            dimension_semantics=dim_sem,
            vmem_limit_bytes=vmem_limit,
        ),
        cost_estimate=cost,
    )(x2d, w1, b1_2d, w2, b2_2d)

    if M_pad != M:
        out = out[:M]
    return out.reshape(orig_shape)


# -----------------------------------------------------------------------------
# Reference + init
# -----------------------------------------------------------------------------
def mlp_block_ref(x, w1, b1, w2, b2, *, approx=True):
    """Pure-JAX f32 reference."""
    xf = x.astype(jnp.float32)
    h = xf @ w1.astype(jnp.float32) + b1.astype(jnp.float32)
    h = _gelu_f32(h, approx)
    return h @ w2.astype(jnp.float32) + b2.astype(jnp.float32)


def init_params(key, w_in, mlp_d, dtype=jnp.float32):
    """Shapes match nn.Linear(w_in, mlp_d)/(mlp_d, w_in); stored as (in, out)."""
    k1, k2, k3, k4 = jax.random.split(key, 4)
    bound1 = 1.0 / math.sqrt(w_in)
    bound2 = 1.0 / math.sqrt(mlp_d)
    w1 = jax.random.uniform(k1, (w_in, mlp_d), dtype, -bound1, bound1)
    b1 = jax.random.uniform(k2, (mlp_d,), dtype, -bound1, bound1)
    w2 = jax.random.uniform(k3, (mlp_d, w_in), dtype, -bound2, bound2)
    b2 = jax.random.uniform(k4, (w_in,), dtype, -bound2, bound2)
    return w1, b1, w2, b2


if __name__ == "__main__":
    # Small ViT-like shapes: batch=2, seq=8, w_in=32, mlp_d=64.
    B, S, W_IN, MLP_D = 2, 8, 32, 64
    key = jax.random.PRNGKey(0)
    kx, kp = jax.random.split(key)
    x = jax.random.normal(kx, (B, S, W_IN), jnp.float32)
    w1, b1, w2, b2 = init_params(kp, W_IN, MLP_D)

    # 1) Default path: VMEM-resident weights + tanh-approx (EUP) GELU.
    y = jax.block_until_ready(mlp_block(x, w1, b1, w2, b2))
    assert y.shape == (B, S, W_IN)
    assert jnp.allclose(y, mlp_block_ref(x, w1, b1, w2, b2, approx=True),
                        atol=1e-5, rtol=1e-5), "approx-GELU mismatch vs reference"

    # 2) Exact-erf GELU path (bit-faithful to PyTorch's default nn.GELU).
    y_exact = jax.block_until_ready(mlp_block(x, w1, b1, w2, b2, approx_gelu=False))
    assert jnp.allclose(y_exact, mlp_block_ref(x, w1, b1, w2, b2, approx=False),
                        atol=1e-5, rtol=1e-5), "exact-GELU mismatch vs reference"
    assert float(jnp.max(jnp.abs(y - y_exact))) < 5e-2, "approx vs exact GELU diverged"

    # 3) Forced chunked-reduction path: ragged M (padding), mlp_d=192 zero-padded
    #    to two 128-wide chunks, f32 output accumulated directly into o_ref.
    MLP2 = 192
    x_odd = jax.random.normal(jax.random.PRNGKey(1), (2, 7, W_IN), jnp.float32)
    p2 = init_params(jax.random.PRNGKey(2), W_IN, MLP2)
    y_odd = jax.block_until_ready(
        mlp_block(x_odd, *p2, tile_d=128, weights_resident=False))
    assert jnp.allclose(y_odd, mlp_block_ref(x_odd, *p2, approx=True),
                        atol=1e-5, rtol=1e-5), "chunked/padded-M mismatch vs reference"

    # 4) bf16 path (native-dtype MXU operands, f32 accumulation in VMEM scratch).
    xb = x.astype(jnp.bfloat16)
    pb = tuple(p.astype(jnp.bfloat16) for p in (w1, b1, w2, b2))
    yb = jax.block_until_ready(mlp_block(xb, *pb, weights_resident=False))
    assert jnp.allclose(yb.astype(jnp.float32), mlp_block_ref(xb, *pb, approx=True),
                        atol=5e-2, rtol=5e-2), "bf16 mismatch vs reference"

    print("KERNEL_OK")
</pallas_src>

<mosaic_0001>
module attributes {stable_mosaic.version = 11 : i64} {
  func.func @_mlp_resident_kernel(%arg0: i32, %arg1: memref<8x32xf32, #tpu.memory_space<vmem>>, %arg2: memref<32x64xf32, #tpu.memory_space<vmem>>, %arg3: memref<1x64xf32, #tpu.memory_space<vmem>>, %arg4: memref<64x32xf32, #tpu.memory_space<vmem>>, %arg5: memref<1x32xf32, #tpu.memory_space<vmem>>, %arg6: memref<8x32xf32, #tpu.memory_space<vmem>>) attributes {dimension_semantics = [#tpu.dimension_semantics<parallel>], iteration_bounds = array<i64: 2>, scalar_prefetch = 0 : i64, scratch_operands = 0 : i64, tpu.core_type = #tpu.core_type<tc>, window_params = [{transform_indices = @transform_0, window_bounds = array<i64: 8, 32>}, {pipeline_mode = #tpu.pipeline_mode<synchronous>, transform_indices = @transform_1, window_bounds = array<i64: 32, 64>}, {pipeline_mode = #tpu.pipeline_mode<synchronous>, transform_indices = @transform_2, window_bounds = array<i64: 1, 64>}, {pipeline_mode = #tpu.pipeline_mode<synchronous>, transform_indices = @transform_3, window_bounds = array<i64: 64, 32>}, {pipeline_mode = #tpu.pipeline_mode<synchronous>, transform_indices = @transform_4, window_bounds = array<i64: 1, 32>}, {transform_indices = @transform_5, window_bounds = array<i64: 8, 32>}]} {
    %c0 = arith.constant 0 : index
    %c0_0 = arith.constant 0 : index
    %0 = vector.load %arg1[%c0, %c0_0] : memref<8x32xf32, #tpu.memory_space<vmem>>, vector<8x32xf32>
    %c0_1 = arith.constant 0 : index
    %c0_2 = arith.constant 0 : index
    %1 = vector.load %arg2[%c0_1, %c0_2] : memref<32x64xf32, #tpu.memory_space<vmem>>, vector<32x64xf32>
    %cst = arith.constant dense<0.000000e+00> : vector<8x64xf32>
    %2 = tpu.matmul %0, %1, %cst {dimension_numbers = #tpu.dot_dimension_numbers<[1], [0], [0], [1], [0, 0, 1, 1], [], []>} : vector<8x32xf32>, vector<32x64xf32>, vector<8x64xf32> -> vector<8x64xf32>
    %c0_3 = arith.constant 0 : index
    %c0_4 = arith.constant 0 : index
    %3 = vector.load %arg3[%c0_3, %c0_4] : memref<1x64xf32, #tpu.memory_space<vmem>>, vector<1x64xf32>
    %4 = vector.broadcast %3 : vector<1x64xf32> to vector<8x64xf32>
    %5 = arith.addf %2, %4 : vector<8x64xf32>
    %cst_5 = arith.constant 5.000000e-01 : f32
    %6 = vector.broadcast %cst_5 : f32 to vector<8x64xf32>
    %7 = arith.mulf %6, %5 : vector<8x64xf32>
    %cst_6 = arith.constant 4.471500e-02 : f32
    %8 = vector.broadcast %cst_6 : f32 to vector<8x64xf32>
    %9 = arith.mulf %8, %5 : vector<8x64xf32>
    %10 = arith.mulf %9, %5 : vector<8x64xf32>
    %11 = arith.mulf %10, %5 : vector<8x64xf32>
    %12 = arith.addf %5, %11 : vector<8x64xf32>
    %cst_7 = arith.constant 0.797884583 : f32
    %13 = vector.broadcast %cst_7 : f32 to vector<8x64xf32>
    %14 = arith.mulf %13, %12 : vector<8x64xf32>
    %15 = math.tanh %14 : vector<8x64xf32>
    %cst_8 = arith.constant 1.000000e+00 : f32
    %16 = vector.broadcast %cst_8 : f32 to vector<8x64xf32>
    %17 = arith.addf %16, %15 : vector<8x64xf32>
    %18 = arith.mulf %7, %17 : vector<8x64xf32>
    %c0_9 = arith.constant 0 : index
    %c0_10 = arith.constant 0 : index
    %19 = vector.load %arg4[%c0_9, %c0_10] : memref<64x32xf32, #tpu.memory_space<vmem>>, vector<64x32xf32>
    %cst_11 = arith.constant dense<0.000000e+00> : vector<8x32xf32>
    %20 = tpu.matmul %18, %19, %cst_11 {dimension_numbers = #tpu.dot_dimension_numbers<[1], [0], [0], [1], [0, 0, 1, 1], [], []>} : vector<8x64xf32>, vector<64x32xf32>, vector<8x32xf32> -> vector<8x32xf32>
    %c0_12 = arith.constant 0 : index
    %c0_13 = arith.constant 0 : index
    %21 = vector.load %arg5[%c0_12, %c0_13] : memref<1x32xf32, #tpu.memory_space<vmem>>, vector<1x32xf32>
    %22 = vector.broadcast %21 : vector<1x32xf32> to vector<8x32xf32>
    %23 = arith.addf %20, %22 : vector<8x32xf32>
    %c0_14 = arith.constant 0 : index
    %c0_15 = arith.constant 0 : index
    %24 = vector.load %arg6[%c0_14, %c0_15] : memref<8x32xf32, #tpu.memory_space<vmem>>, vector<8x32xf32>
    tpu.vector_store %arg6[%c0_14, %c0_15], %23 {strides = array<i32>} : memref<8x32xf32, #tpu.memory_space<vmem>>, vector<8x32xf32>,
    return
  }
  func.func @transform_0(%arg0: i32) -> (i32, i32) {
    %c0_i32 = arith.constant 0 : i32
    %c0_i32_0 = arith.constant 0 : i32
    return %arg0, %c0_i32 : i32, i32
  }
  func.func @transform_1(%arg0: i32) -> (i32, i32) {
    %c0_i32 = arith.constant 0 : i32
    %c0_i32_0 = arith.constant 0 : i32
    %c0_i32_1 = arith.constant 0 : i32
    return %c0_i32, %c0_i32_0 : i32, i32
  }
  func.func @transform_2(%arg0: i32) -> (i32, i32) {
    %c0_i32 = arith.constant 0 : i32
    %c0_i32_0 = arith.constant 0 : i32
    %c0_i32_1 = arith.constant 0 : i32
    return %c0_i32, %c0_i32_0 : i32, i32
  }
  func.func @transform_3(%arg0: i32) -> (i32, i32) {
    %c0_i32 = arith.constant 0 : i32
    %c0_i32_0 = arith.constant 0 : i32
    %c0_i32_1 = arith.constant 0 : i32
    return %c0_i32, %c0_i32_0 : i32, i32
  }
  func.func @transform_4(%arg0: i32) -> (i32, i32) {
    %c0_i32 = arith.constant 0 : i32
    %c0_i32_0 = arith.constant 0 : i32
    %c0_i32_1 = arith.constant 0 : i32
    return %c0_i32, %c0_i32_0 : i32, i32
  }
  func.func @transform_5(%arg0: i32) -> (i32, i32) {
    %c0_i32 = arith.constant 0 : i32
    %c0_i32_0 = arith.constant 0 : i32
    return %arg0, %c0_i32 : i32, i32
  }
}

</mosaic_0001>

<bundles_post_ra>
// kernel: tpu_custom_call.1
= control target key start
LH: loop header
LB: loop body
LE: loop exit
PB: predicated region body
PF: predicated region fallthrough
CT: control target
= control target key end

     0   :  { %10 = vsyncpa [#allocation3], 0  ;;  %s840_s0 = inlined_call_operand.vmem [shape: f32[16,32], index: 0, kind: input, shape index: {}]   ;;  %s841_s1 = inlined_call_operand.vmem [shape: f32[32,64], index: 1, kind: input, shape index: {}]   ;;  %s842_s2 = inlined_call_operand.vmem [shape: f32[1,64], index: 2, kind: input, shape index: {}]   ;;  %s843_s3 = inlined_call_operand.vmem [shape: f32[64,32], index: 3, kind: input, shape index: {}]   ;;  %s844_s4 = inlined_call_operand.vmem [shape: f32[1,32], index: 4, kind: input, shape index: {}]   ;;  %s845_s5 = inlined_call_operand.hbm [shape: f32[16,32], index: 5, kind: output, shape index: {}]  }
   0x1   :  { %12 = vsyncpa [#allocation3 + $0x1], 0  ;;  %s696_s18 = smov 0   ;;  %s698_s19 = smov 0  }
   0x2   :  { %s700_s20 = smov 0   ;;  %s702_s21 = smov 0  }
   0x3 LB: > { %s717_s22 = sadd.s32 4294967295, %s660_s21   ;;  %s478_s23 = sadd.s32 4294967294, %s660_s21   ;;  %s660_s21 = sphi %s702_s21, %s851_s21   ;;  %s656_s20 = sphi %s700_s20, %s850_s20   ;;  %s652_s19 = sphi %s698_s19, %s849_s19   ;;  %s648_s18 = sphi %s696_s18, %s848_s18  }
   0x4   : > { %s721_s24 = sadd.s32 1, %s660_s21   ;;  %s135_s25 = sadd.s32 1, %s656_s20 }
   0x5   : > { %s132_s26 = ssub.s32 %s660_s21, %s721_s24  ;;  %p145_p0 = scmp.ne.s32.totalorder %s656_s20, %s652_s19 }
   0x6   : > { %p133_p1 = scmp.eq.s32.totalorder %s132_s26, 0  ;;  %p146_p2 = scmp.eq.s32.totalorder %s717_s22, 1 }
   0x7   : > { %p151_p3 = scmp.ne.s32.totalorder %s652_s19, %s648_s18  ;;  %p152_p4 = scmp.eq.s32.totalorder %s478_s23, 1 }
   0x8   : > { %s732_s27 = scalar_select %p133_p1, %s656_s20, %s135_s25  }
   0x9   : > { %p734_p5 = por %p146_p2, %p145_p0  ;;  %p738_p6 = por %p152_p4, %p151_p3 }
   0xa   : > { %p481_p7 = scmp.ge.s32.totalorder %s660_s21, 1  ;;  %p189_p8 = scmp.lt.s32.totalorder %s660_s21, 3 }
   0xc   : > { %p190_p9 = pnand %p481_p7, %p189_p8 }
   0xd   : > { %v221_v0 = vld [vmem:[%s841_s1] sm:$0xff] (!%p190_p9)  ;;  %v222_v1 = vld [vmem:[%s841_s1 + $0x8] sm:$0xff] (!%p190_p9)  ;;  %v223_v2 = vld [vmem:[%s841_s1 + $0x10] sm:$0xff] (!%p190_p9)  ;;  %v662_v3 = vmov (!%p190_p9), 0.0|0.0   ;;  %vm663_vm0 = vmmov (!%p190_p9), 0   ;;  %v664_v6 = vmov (!%p190_p9), 0.0  }
   0xe   : > { %193 = sbr.rel (%p190_p9) target bundleno = 493 (0x1ed), region = 40  ;;  %536 = vmatprep.subr.bf16.mxu0 (!%p190_p9), %v662_v3  ;;  %v537_v4 = vpack.c.bf16 (!%p190_p9), %v222_v1, %v221_v0  ;;  %v224_v5 = vld [vmem:[%s841_s1 + $0x18] sm:$0xff] (!%p190_p9)  ;;  %514 = vmatprep.mubr.msk.f32.mxu0 (!%p190_p9), %vm663_vm0, %v664_v6  ;;  %p216_p10 = scmp.lt.s32.totalorder (!%p190_p9), %s717_s22, 1  ;;  %vm232_vm1 = vcmask (!%p190_p9), 261120   ;;  %v315_v9 = vld [vmem:[%s843_s3] sm:$0xff] (!%p190_p9)  ;;  %v316_v10 = vld [vmem:[%s843_s3 + $0x8] sm:$0xff] (!%p190_p9) }
   0xf   : > { %542 = vmatprep.subr.bf16.mxu1 (!%p190_p9), %v662_v3  ;;  %533 = vmatprep.mubr.msk.f32.mxu1 (!%p190_p9), %vm663_vm0, %v664_v6  ;;  %v540_v7 = vpack.c.bf16 (!%p190_p9), %v224_v5, %v223_v2  ;;  %v317_v11 = vld [vmem:[%s843_s3 + $0x10] sm:$0xff] (!%p190_p9)  ;;  %v543_v12 = vpack.c.bf16 (!%p190_p9), %v316_v10, %v315_v9  ;;  %v318_v13 = vld [vmem:[%s843_s3 + $0x18] sm:$0xff] (!%p190_p9)  ;;  %v319_v15 = vld [vmem:[%s843_s3 + $0x20] sm:$0xff] (!%p190_p9)  ;;  %vm330_vm2 = vcmask (!%p190_p9), 523264   ;;  %s213_s26 = sand.u32 (!%p190_p9), 1, %s652_s19   ;;  %s489_s8 = sshll.u32 (!%p190_p9), %s717_s22, 7 }
  0x10   : > { %538 = vmatpush3.bf16.msra.mxu0 (!%p190_p9), %v537_v4  ;;  %v546_v14 = vpack.c.bf16 (!%p190_p9), %v318_v13, %v317_v11  ;;  %v320_v16 = vld [vmem:[%s843_s3 + $0x28] sm:$0xff] (!%p190_p9)  ;;  %v321_v18 = vld [vmem:[%s843_s3 + $0x30] sm:$0xff] (!%p190_p9)  ;;  %v322_v19 = vld [vmem:[%s843_s3 + $0x38] sm:$0xff] (!%p190_p9)  ;;  %s482_s30 = sshll.u32 (!%p190_p9), %s213_s26, 3 }
  0x11   : > { %539 = vmatprep.subr.bf16.mxu0 (!%p190_p9), %v662_v3  ;;  %544 = vmatpush3.bf16.msra.mxu1 (!%p190_p9), %v543_v12  ;;  %v549_v17 = vpack.c.bf16 (!%p190_p9), %v320_v16, %v319_v15  ;;  %v552_v20 = vpack.c.bf16 (!%p190_p9), %v322_v19, %v321_v18  ;;  %v484_v21 = vld [vmem:[%s842_s2] ss:$0 sm:$0xff] (!%p190_p9)  ;;  %s215_s9 = scalar_lea.vmem (!%p190_p9), [#allocation2], %s482_s30 }
  0x12   : > { %545 = vmatprep.subr.bf16.mxu1 (!%p190_p9), %v662_v3  ;;  %v486_v34 = vld [vmem:[%s844_s4] ss:$0 sm:$0xff] (!%p190_p9)  ;;  %s419_s10 = sshll.u32 (!%p190_p9), %s215_s9, 4  ;;  %s799_s10 = int_to_ptr.vmem [resolvable:$true] %s419_s10 }
  0x13   : > { %s598_s15 = scalar_lea.vmem (!%p190_p9), %s799_s10, 128 }
  0x14   : > { %541 = vmatpush3.bf16.msra.mxu0 (!%p190_p9), %v540_v7  ;;  %p599_p11 = scmp.ne.s32.totalorder (!%p190_p9), %s799_s10, %s598_s15 }
  0x15   : > { %s217_s13 = scalar_select %p216_p10, %s717_s22, 1  ;;  %547 = vmatpush3.bf16.msra.mxu1 %v546_v14 }
  0x16   : > { %548 = vmatprep.subr.bf16.mxu1 %v662_v3  ;;  %p600_p12 = pnand %p599_p11, %p734_p5  ;;  %s665_s22 = smov [#allocation2]  }
  0x17   : > { %s483_s14 = sshll.u32 %s217_s13, 3  ;;  %s797_s13 = scalar_lea.hbm %s845_s5, %s489_s8 }
  0x18   : > { %s219_s17 = scalar_lea.vmem %s840_s0, %s483_s14  ;;  %s406_s14 = scalar_lea.sflag [#allocation3], %s213_s26 }
  0x19   : > { %v220_v8 = vld [vmem:[%s219_s17] sm:$0xff]  ;;  %550 = vmatpush3.bf16.msra.mxu1 %v549_v17  ;;  %p601_p13 = pneg %p600_p12  ;;  %s602_s16 = sshll.u32 %s665_s22, 4  ;;  %s603_s16 = int_to_ptr.vmem [resolvable:$false] %s602_s16 }
  0x1a   : > { %515 = vmatmul.mubr.msk.f32.vlgmr.msra.gmra.mrb[0].mxu0 %vm232_vm1, %v220_v8  ;;  %551 = vmatprep.subr.bf16.mxu1 %v662_v3  ;;  %s604_s17 = scalar_lea.vmem %s603_s16, 256  ;;  %p605_p0 = scmp.lt.s32.totalorder %s799_s10, %s603_s16 }
  0x1b   : > { %p606_p1 = scmp.lt.s32.totalorder %s604_s17, %s598_s15 }
  0x1d   : > { %553 = vmatpush3.bf16.msra.mxu1 %v552_v20  ;;  %p607_p2 = por %p606_p1, %p605_p0 }
  0x1f   : > { %p608_p3 = pnand %p607_p2, %p601_p13 }
  0xed   : > { %v302_v22 = vpop.f32.mrb[0].mxu0 }
  0xee   : > { %v303_v23 = vadd.f32 %v484_v21, %v302_v22  ;;  %v516_v24 = vpop.f32.mrb[1].mxu0 }
  0xf0   : > { %v307_v25 = vmul.f32 0.044715, %v303_v23  ;;  %v306_v31 = vmul.f32 0.5, %v303_v23 }
  0xf2   : > { %v308_v26 = vmul.f32 %v307_v25, %v303_v23 }
  0xf4   : > { %v309_v27 = vmul.f32 %v308_v26, %v303_v23 }
  0xf6   : > { %v310_v28 = vadd.f32 %v309_v27, %v303_v23 }
  0xf8   : > { %v311_v29 = vmul.f32 0.7978846, %v310_v28 }
  0xfa   : > { %596 = vtanh.f32 %v311_v29 }
 0x104   : > { %v597_v30 = vpop.eup %596 }
 0x105   : > { %v313_v32 = vadd.f32 1.0, %v597_v30 }
 0x107   : > { %v314_v33 = vmul.f32 %v313_v32, %v306_v31 }
 0x109   : > { %534 = vmatmul.mubr.msk.f32.vlgmr.msra.gmra.mrb[0].mxu1 %vm330_vm2, %v314_v33 }
 0x1dc   : > { %v400_v35 = vpop.f32.mrb[0].mxu1 }
 0x1dd   : > { %v401_v36 = vadd.f32 %v486_v34, %v400_v35  ;;  %v535_v37 = vpop.f32.mrb[1].mxu1 }
 0x1df   : > { %404 = vst.msk [vmem:[%s215_s9] sm:$0xff] %vm232_vm1, %v401_v36 }
 0x1e0   : > { %611 = shalt.err (!%p608_p3)
}
 0x1e1   : > { %s612_s23 = scalar_lea.hbm %s797_s13, 128  ;;  %s616_s30 = scalar_lea.hbm %s845_s5, 256 }
 0x1e2   : > { %p613_p4 = scmp.ne.s32.totalorder %s797_s13, %s612_s23  ;;  %p617_p9 = scmp.lt.u32.totalorder %s797_s13, %s845_s5 }
 0x1e3   : > { %p618_p10 = scmp.lt.u32.totalorder %s616_s30, %s612_s23  ;;  %p620_p12 = scmp.lt.u32.totalorder %s612_s23, %s797_s13 }
 0x1e4   : > { %p614_p7 = pnand %p613_p4, %p734_p5 }
 0x1e5   : > { %p619_p11 = por %p618_p10, %p617_p9 }
 0x1e6   : > { %p615_p8 = pneg %p614_p7 }
 0x1e7   : > { %p621_p13 = por %p620_p12, %p619_p11 }
 0x1e9   : > { %p622_p0 = pnand %p621_p13, %p615_p8 }
 0x1eb   : > { %625 = shalt.err (!%p622_p0)
}
 0x1ec   : > { %554 = dma.vmem_to_hbm [thread:$0]  (%p734_p5), %s799_s10, 128, %s797_s13, %s406_s14  }
 0x1ed PF: > { %p560_p1 = scmp.ge.s32.totalorder %s660_s21, 2  ;;  %s431_s8 = sand.u32 1, %s648_s18  }
 0x1ee   : > { %s432_s9 = scalar_lea.sflag [#allocation3], %s431_s8 }
 0x1ef   : > { %p557_p2 = pnand %p560_p1, %p738_p6 }
 0x1f1   : > { %643 = dma.done.wait (!%p557_p2), %s432_s9, 128  }
 0x1f2   : > { %645 = vsyncadd (!%p557_p2), %s432_s9, 4294967168  ;;  %p15_p3 = scmp.ge.s32.totalorder %s721_s24, 4   ;;  %s848_s18 = smov %s652_s19 }
 0x1f3   : > { %s849_s19 = smov %s656_s20  ;;  %s850_s20 = smov %s732_s27 }
 0x1f4   : > { %s851_s21 = smov %s721_s24  ;;  %17 = sbr.rel (!%p15_p3) target bundleno = 3 (0x3), region = 75 }
 0x1fb   :  { %437 = vsyncpa [#allocation3], 1 }
 0x1fc   :  { %439 = vsyncpa [#allocation3 + $0x1], 1 }

</bundles_post_ra>
